<compile_context>
chip_gen: v6e
topology: v6e:2x2x1
jax: 0.10.0
libtpu: 0.0.40
codegen_flags: <defaults>
</compile_context>

<pallas_src>
import functools

import jax
import jax.numpy as jnp
from jax.experimental import pallas as pl
from jax.experimental.pallas import tpu as pltpu


def _round_up(x, m):
    return (x + m - 1) // m * m


def _conv_bn_relu_kernel(x_ref, w_ref, b_ref, o_ref, *, H, KH, BT):
    """Fused conv(3x3, SAME) + folded-BN bias + ReLU, batch folded into M.

    x_ref : (BT, Hp, KINP)        zero-padded input rows (lane dim padded to 128)
    w_ref : (KH, KINP, NOUT)      banded (block-Toeplitz) weights, BN scale folded
    b_ref : (1, NOUT)             folded per-channel bias tiled across W
    o_ref : (BT, H, NOUT)         lane-dense output rows
    """
    kinp = x_ref.shape[-1]
    nout = o_ref.shape[-1]

    acc = jnp.zeros((BT * H, nout), dtype=jnp.float32)
    # KH matmuls with M = BT*H, K = KINP (128-aligned), N = NOUT (lane-dense).
    # The kh slice is a cheap sublane-offset row slice; the reshape only merges
    # the batch dim into sublanes (H is a multiple of 8), no lane relayout.
    for kh in range(KH):
        xs = x_ref[:, kh:kh + H, :].reshape(BT * H, kinp)
        acc += jnp.dot(xs, w_ref[kh], preferred_element_type=jnp.float32)

    # Single epilogue (bias broadcast happens once per grid step), f32 VPU math.
    y = jnp.maximum(acc + b_ref[...], 0.0)
    o_ref[...] = y.reshape(BT, H, nout).astype(o_ref.dtype)


def _pick_batch_tile(n, h):
    """Batch elements per grid step.

    v5e/v6e have a single TensorCore, so for small N one grid step is best
    (each extra step costs ~0.35us).  Cap BT so M = BT*H stays <= 256 (full
    MXU rows on v6e/v7x, 2 passes on v5e) and the code size stays bounded.
    """
    cap = min(max(1, 256 // max(h, 1)), 32)
    if n <= cap:
        return n
    for d in range(cap, 0, -1):
        if n % d == 0:
            return d
    return 1


def fold_conv_bn_weights(w_oihw, conv_bias, gamma, beta, running_mean,
                         running_var, eps, W, operand_dtype=jnp.bfloat16):
    """One-time prep: BN fold + banded (block-Toeplitz) weight expansion.

    Returns:
      bmat     : (KH, KINP, NOUT) in operand_dtype, KINP = round_up(Wp*Cin, 128)
      bias_row : (1, NOUT) float32
    """
    Cout, Cin, KH, KW = w_oihw.shape
    pad = (KH - 1) // 2
    Wp = W + 2 * pad
    KIN = Wp * Cin
    KINP = _round_up(KIN, 128)          # pad contraction to lane width
    NOUT = W * Cout

    w_hwio = jnp.transpose(w_oihw, (2, 3, 1, 0))                  # (KH, KW, Cin, Cout)
    scale = gamma / jnp.sqrt(running_var + eps)                   # (Cout,)
    bias_ch = beta + (conv_bias - running_mean) * scale           # (Cout,)
    w_scaled = w_hwio * scale[None, None, None, :]                # fold BN scale into W

    # Banded weight: Bmat[kh, (w+kw)*Cin+ci, w*Cout+co] = w_scaled[kh, kw, ci, co]
    wi = jnp.arange(W)
    ki = jnp.arange(KW)
    ci = jnp.arange(Cin)
    co = jnp.arange(Cout)
    rows = ((wi[:, None, None, None] + ki[None, :, None, None]) * Cin
            + ci[None, None, :, None])                            # (W, KW, Cin, 1)
    cols = wi[:, None, None, None] * Cout + co[None, None, None, :]  # (W, 1, 1, Cout)
    rows = jnp.broadcast_to(rows, (W, KW, Cin, Cout)).reshape(-1)
    cols = jnp.broadcast_to(cols, (W, KW, Cin, Cout)).reshape(-1)
    vals = jnp.broadcast_to(w_scaled[:, None, :, :, :],
                            (KH, W, KW, Cin, Cout)).reshape(KH, -1)
    bmat = jnp.zeros((KH, KINP, NOUT), jnp.float32).at[:, rows, cols].set(vals)

    bias_row = jnp.tile(bias_ch, W).reshape(1, NOUT).astype(jnp.float32)
    # TODO(synk): at production W/Cin this banded matrix is ~KW/Wp dense; switch
    #             to W-tiled banded blocks or a kw-shift formulation.
    return bmat.astype(operand_dtype), bias_row


def conv_brunch_forward(x_nchw, bmat, bias_row, *, KH=3, out_dtype=jnp.float32):
    """Forward pass of ConvBrunch. x_nchw: (N, Cin, H, W) -> (N, Cout, H, W)."""
    N, Cin, H, W = x_nchw.shape
    pad = (KH - 1) // 2
    Hp, Wp = H + 2 * pad, W + 2 * pad
    KIN = Wp * Cin
    KINP = bmat.shape[1]
    NOUT = bmat.shape[2]
    Cout = NOUT // W
    operand_dtype = bmat.dtype

    # ---- per-call layout glue (plain JAX) ----
    x_nhwc = jnp.transpose(x_nchw, (0, 2, 3, 1))                      # NCHW -> NHWC
    x_pad = jnp.pad(x_nhwc, ((0, 0), (pad, pad), (pad, pad), (0, 0)))
    x_rows = x_pad.reshape(N, Hp, KIN)                                # (N, Hp, Wp*Cin)
    if KINP > KIN:
        x_rows = jnp.pad(x_rows, ((0, 0), (0, 0), (0, KINP - KIN)))   # lane-pad to 128
    x_rows = x_rows.astype(operand_dtype)

    bt = _pick_batch_tile(N, H)
    grid = (N // bt,)
    kernel = functools.partial(_conv_bn_relu_kernel, H=H, KH=KH, BT=bt)

    out_rows = pl.pallas_call(
        kernel,
        out_shape=jax.ShapeDtypeStruct((N, H, NOUT), out_dtype),
        grid_spec=pltpu.PrefetchScalarGridSpec(
            num_scalar_prefetch=0,
            grid=grid,
            in_specs=[
                pl.BlockSpec((bt, Hp, KINP), lambda n: (n, 0, 0)),
                pl.BlockSpec((KH, KINP, NOUT), lambda n: (0, 0, 0)),
                pl.BlockSpec((1, NOUT), lambda n: (0, 0)),
            ],
            out_specs=pl.BlockSpec((bt, H, NOUT), lambda n: (n, 0, 0)),
        ),
        # Batch axis is independent across grid steps.  VMEM footprint is tiny
        # at these shapes; at production sizes add a NOUT column-tile axis and
        # set vmem_limit_bytes explicitly.
        compiler_params=pltpu.CompilerParams(
            dimension_semantics=("parallel",)),
    )(x_rows, bmat, bias_row)

    out_nhwc = out_rows.reshape(N, H, W, Cout)
    return jnp.transpose(out_nhwc, (0, 3, 1, 2))                      # NHWC -> NCHW


def _reference(x_nchw, w_oihw, conv_bias, gamma, beta, running_mean, running_var, eps=1e-5):
    y = jax.lax.conv_general_dilated(
        x_nchw, w_oihw, window_strides=(1, 1), padding="SAME",
        dimension_numbers=("NCHW", "OIHW", "NCHW"))
    y = y + conv_bias[None, :, None, None]
    y = (y - running_mean[None, :, None, None]) / jnp.sqrt(
        running_var[None, :, None, None] + eps)
    y = y * gamma[None, :, None, None] + beta[None, :, None, None]
    return jnp.maximum(y, 0.0)


if __name__ == "__main__":
    # Small shapes consistent with the module: in_planes=4, out_planes=8, k=3.
    N, Cin, H, W = 2, 4, 16, 16
    Cout, K = 8, 3
    EPS = 1e-5

    key = jax.random.PRNGKey(0)
    k1, k2, k3, k4, k5, k6, k7 = jax.random.split(key, 7)

    x = jax.random.normal(k1, (N, Cin, H, W), dtype=jnp.float32)
    w = jax.random.normal(k2, (Cout, Cin, K, K), dtype=jnp.float32) * 0.1
    conv_bias = jax.random.normal(k3, (Cout,), dtype=jnp.float32) * 0.1
    gamma = 1.0 + 0.1 * jax.random.normal(k4, (Cout,), dtype=jnp.float32)
    beta = 0.1 * jax.random.normal(k5, (Cout,), dtype=jnp.float32)
    running_mean = 0.1 * jax.random.normal(k6, (Cout,), dtype=jnp.float32)
    running_var = jnp.abs(1.0 + 0.1 * jax.random.normal(k7, (Cout,), dtype=jnp.float32))

    ref = _reference(x, w, conv_bias, gamma, beta, running_mean, running_var, EPS)

    # ---- f32 operand path: strict check ----
    bmat_f32, bias_row = fold_conv_bn_weights(
        w, conv_bias, gamma, beta, running_mean, running_var, EPS, W,
        operand_dtype=jnp.float32)
    fwd_f32 = jax.jit(functools.partial(conv_brunch_forward, KH=K, out_dtype=jnp.float32))
    out_f32 = jax.block_until_ready(fwd_f32(x, bmat_f32, bias_row))
    assert out_f32.shape == (N, Cout, H, W)
    assert jnp.allclose(out_f32, ref, atol=1e-4, rtol=1e-4), "f32 mismatch vs reference"

    # ---- bf16 operand path (MXU-native, f32 accumulate), bf16 output ----
    bmat_bf16, bias_row_bf16 = fold_conv_bn_weights(
        w, conv_bias, gamma, beta, running_mean, running_var, EPS, W,
        operand_dtype=jnp.bfloat16)
    fwd_bf16 = jax.jit(functools.partial(conv_brunch_forward, KH=K, out_dtype=jnp.bfloat16))
    out_bf16 = jax.block_until_ready(fwd_bf16(x, bmat_bf16, bias_row_bf16))
    assert out_bf16.shape == (N, Cout, H, W)
    assert jnp.allclose(out_bf16.astype(jnp.float32), ref, atol=3e-2, rtol=3e-2), \
        "bf16 mismatch vs reference"

    print("KERNEL_OK")
</pallas_src>

<mosaic_0001>
module attributes {stable_mosaic.version = 11 : i64} {
  func.func @_conv_bn_relu_kernel(%arg0: i32, %arg1: memref<2x18x128xf32, #tpu.memory_space<vmem>>, %arg2: memref<3x128x128xf32, #tpu.memory_space<vmem>>, %arg3: memref<1x128xf32, #tpu.memory_space<vmem>>, %arg4: memref<2x16x128xf32, #tpu.memory_space<vmem>>) attributes {dimension_semantics = [#tpu.dimension_semantics<parallel>], iteration_bounds = array<i64: 1>, scalar_prefetch = 0 : i64, scratch_operands = 0 : i64, tpu.core_type = #tpu.core_type<tc>, window_params = [{transform_indices = @transform_0, window_bounds = array<i64: 2, 18, 128>}, {pipeline_mode = #tpu.pipeline_mode<synchronous>, transform_indices = @transform_1, window_bounds = array<i64: 3, 128, 128>}, {pipeline_mode = #tpu.pipeline_mode<synchronous>, transform_indices = @transform_2, window_bounds = array<i64: 1, 128>}, {transform_indices = @transform_3, window_bounds = array<i64: 2, 16, 128>}]} {
    %cst = arith.constant 0.000000e+00 : f32
    %0 = vector.broadcast %cst : f32 to vector<32x128xf32>
    %c0 = arith.constant 0 : index
    %c0_0 = arith.constant 0 : index
    %c0_1 = arith.constant 0 : index
    %1 = vector.load %arg1[%c0, %c0_0, %c0_1] : memref<2x18x128xf32, #tpu.memory_space<vmem>>, vector<2x16x128xf32>
    %2 = vector.shape_cast %1 : vector<2x16x128xf32> to vector<32x128xf32>
    %c0_2 = arith.constant 0 : index
    %c0_3 = arith.constant 0 : index
    %c0_4 = arith.constant 0 : index
    %3 = vector.load %arg2[%c0_2, %c0_3, %c0_4] : memref<3x128x128xf32, #tpu.memory_space<vmem>>, vector<1x128x128xf32>
    %4 = vector.shape_cast %3 : vector<1x128x128xf32> to vector<128x128xf32>
    %cst_5 = arith.constant dense<0.000000e+00> : vector<32x128xf32>
    %5 = tpu.matmul %2, %4, %cst_5 {dimension_numbers = #tpu.dot_dimension_numbers<[1], [0], [0], [1], [0, 0, 1, 1], [], []>} : vector<32x128xf32>, vector<128x128xf32>, vector<32x128xf32> -> vector<32x128xf32>
    %6 = arith.addf %0, %5 : vector<32x128xf32>
    %c0_6 = arith.constant 0 : index
    %c1 = arith.constant 1 : index
    %c0_7 = arith.constant 0 : index
    %7 = vector.load %arg1[%c0_6, %c1, %c0_7] : memref<2x18x128xf32, #tpu.memory_space<vmem>>, vector<2x16x128xf32>
    %8 = vector.shape_cast %7 : vector<2x16x128xf32> to vector<32x128xf32>
    %c1_8 = arith.constant 1 : index
    %c0_9 = arith.constant 0 : index
    %c0_10 = arith.constant 0 : index
    %9 = vector.load %arg2[%c1_8, %c0_9, %c0_10] : memref<3x128x128xf32, #tpu.memory_space<vmem>>, vector<1x128x128xf32>
    %10 = vector.shape_cast %9 : vector<1x128x128xf32> to vector<128x128xf32>
    %cst_11 = arith.constant dense<0.000000e+00> : vector<32x128xf32>
    %11 = tpu.matmul %8, %10, %cst_11 {dimension_numbers = #tpu.dot_dimension_numbers<[1], [0], [0], [1], [0, 0, 1, 1], [], []>} : vector<32x128xf32>, vector<128x128xf32>, vector<32x128xf32> -> vector<32x128xf32>
    %12 = arith.addf %6, %11 : vector<32x128xf32>
    %c0_12 = arith.constant 0 : index
    %c2 = arith.constant 2 : index
    %c0_13 = arith.constant 0 : index
    %13 = vector.load %arg1[%c0_12, %c2, %c0_13] : memref<2x18x128xf32, #tpu.memory_space<vmem>>, vector<2x16x128xf32>
    %14 = vector.shape_cast %13 : vector<2x16x128xf32> to vector<32x128xf32>
    %c2_14 = arith.constant 2 : index
    %c0_15 = arith.constant 0 : index
    %c0_16 = arith.constant 0 : index
    %15 = vector.load %arg2[%c2_14, %c0_15, %c0_16] : memref<3x128x128xf32, #tpu.memory_space<vmem>>, vector<1x128x128xf32>
    %16 = vector.shape_cast %15 : vector<1x128x128xf32> to vector<128x128xf32>
    %cst_17 = arith.constant dense<0.000000e+00> : vector<32x128xf32>
    %17 = tpu.matmul %14, %16, %cst_17 {dimension_numbers = #tpu.dot_dimension_numbers<[1], [0], [0], [1], [0, 0, 1, 1], [], []>} : vector<32x128xf32>, vector<128x128xf32>, vector<32x128xf32> -> vector<32x128xf32>
    %18 = arith.addf %12, %17 : vector<32x128xf32>
    %c0_18 = arith.constant 0 : index
    %c0_19 = arith.constant 0 : index
    %19 = vector.load %arg3[%c0_18, %c0_19] : memref<1x128xf32, #tpu.memory_space<vmem>>, vector<1x128xf32>
    %20 = vector.broadcast %19 : vector<1x128xf32> to vector<32x128xf32>
    %21 = arith.addf %18, %20 : vector<32x128xf32>
    %cst_20 = arith.constant 0.000000e+00 : f32
    %22 = vector.broadcast %cst_20 : f32 to vector<32x128xf32>
    %23 = arith.maximumf %21, %22 : vector<32x128xf32>
    %24 = vector.shape_cast %23 : vector<32x128xf32> to vector<2x16x128xf32>
    %c0_21 = arith.constant 0 : index
    %c0_22 = arith.constant 0 : index
    %c0_23 = arith.constant 0 : index
    %25 = vector.load %arg4[%c0_21, %c0_22, %c0_23] : memref<2x16x128xf32, #tpu.memory_space<vmem>>, vector<2x16x128xf32>
    tpu.vector_store %arg4[%c0_21, %c0_22, %c0_23], %24 {strides = array<i32>} : memref<2x16x128xf32, #tpu.memory_space<vmem>>, vector<2x16x128xf32>,
    return
  }
  func.func @transform_0(%arg0: i32) -> (i32, i32, i32) {
    %c0_i32 = arith.constant 0 : i32
    %c0_i32_0 = arith.constant 0 : i32
    %c0_i32_1 = arith.constant 0 : i32
    return %arg0, %c0_i32, %c0_i32_0 : i32, i32, i32
  }
  func.func @transform_1(%arg0: i32) -> (i32, i32, i32) {
    %c0_i32 = arith.constant 0 : i32
    %c0_i32_0 = arith.constant 0 : i32
    %c0_i32_1 = arith.constant 0 : i32
    %c0_i32_2 = arith.constant 0 : i32
    return %c0_i32, %c0_i32_0, %c0_i32_1 : i32, i32, i32
  }
  func.func @transform_2(%arg0: i32) -> (i32, i32) {
    %c0_i32 = arith.constant 0 : i32
    %c0_i32_0 = arith.constant 0 : i32
    %c0_i32_1 = arith.constant 0 : i32
    return %c0_i32, %c0_i32_0 : i32, i32
  }
  func.func @transform_3(%arg0: i32) -> (i32, i32, i32) {
    %c0_i32 = arith.constant 0 : i32
    %c0_i32_0 = arith.constant 0 : i32
    %c0_i32_1 = arith.constant 0 : i32
    return %arg0, %c0_i32, %c0_i32_0 : i32, i32, i32
  }
}

</mosaic_0001>

<bundles_post_ra>
// kernel: conv_brunch_forward.1
= control target key start
LH: loop header
LB: loop body
LE: loop exit
PB: predicated region body
PF: predicated region fallthrough
CT: control target
= control target key end

     0   :  { %s812_s1 = inlined_call_operand.vmem [shape: f32[3,128,128], index: 1, kind: input, shape index: {}]   ;;  %s813_s0 = inlined_call_operand.vmem [shape: f32[2,18,128], index: 0, kind: input, shape index: {}]   ;;  %s814_s2 = inlined_call_operand.vmem [shape: f32[1,128], index: 2, kind: input, shape index: {}]   ;;  %s815_s3 = inlined_call_operand.vmem [shape: f32[2,16,128], index: 3, kind: output, shape index: {}]  }
   0x1   :  { %v373_v0 = vld [vmem:[%s812_s1 + $0xf8] sm:$0xff]  ;;  %v372_v2 = vld [vmem:[%s812_s1 + $0xf0] sm:$0xff]  ;;  %v371_v4 = vld [vmem:[%s812_s1 + $0xe8] sm:$0xff] }
   0x2   :  { %v33_v1 = vld [vmem:[%s812_s1 + $0x78] sm:$0xff]  ;;  %451 = vmatprep.subr.mxu0 %v373_v0  ;;  %v32_v3 = vld [vmem:[%s812_s1 + $0x70] sm:$0xff]  ;;  %v31_v5 = vld [vmem:[%s812_s1 + $0x68] sm:$0xff] }
   0x3   :  { %489 = vmatprep.subr.mxu1 %v33_v1  ;;  %452 = vmatpush3.msra.mxu0 %v373_v0  ;;  %v370_v6 = vld [vmem:[%s812_s1 + $0xe0] sm:$0xff]  ;;  %v369_v8 = vld [vmem:[%s812_s1 + $0xd8] sm:$0xff]  ;;  %v368_v10 = vld [vmem:[%s812_s1 + $0xd0] sm:$0xff] }
   0x4   :  { %490 = vmatpush3.msra.mxu1 %v33_v1  ;;  %453 = vmatprep.subr.mxu0 %v372_v2  ;;  %v30_v7 = vld [vmem:[%s812_s1 + $0x60] sm:$0xff]  ;;  %v29_v9 = vld [vmem:[%s812_s1 + $0x58] sm:$0xff]  ;;  %v28_v11 = vld [vmem:[%s812_s1 + $0x50] sm:$0xff] }
   0x5   :  { %491 = vmatprep.subr.mxu1 %v32_v3  ;;  %454 = vmatpush3.msra.mxu0 %v372_v2  ;;  %v367_v12 = vld [vmem:[%s812_s1 + $0xc8] sm:$0xff]  ;;  %v366_v14 = vld [vmem:[%s812_s1 + $0xc0] sm:$0xff]  ;;  %v365_v16 = vld [vmem:[%s812_s1 + $0xb8] sm:$0xff] }
   0x6   :  { %492 = vmatpush3.msra.mxu1 %v32_v3  ;;  %455 = vmatprep.subr.mxu0 %v371_v4  ;;  %v27_v13 = vld [vmem:[%s812_s1 + $0x48] sm:$0xff]  ;;  %v26_v15 = vld [vmem:[%s812_s1 + $0x40] sm:$0xff]  ;;  %v25_v17 = vld [vmem:[%s812_s1 + $0x38] sm:$0xff] }
   0x7   :  { %493 = vmatprep.subr.mxu1 %v31_v5  ;;  %456 = vmatpush3.msra.mxu0 %v371_v4  ;;  %v364_v18 = vld [vmem:[%s812_s1 + $0xb0] sm:$0xff]  ;;  %v363_v20 = vld [vmem:[%s812_s1 + $0xa8] sm:$0xff]  ;;  %v362_v22 = vld [vmem:[%s812_s1 + $0xa0] sm:$0xff] }
   0x8   :  { %494 = vmatpush3.msra.mxu1 %v31_v5  ;;  %457 = vmatprep.subr.mxu0 %v370_v6  ;;  %v24_v19 = vld [vmem:[%s812_s1 + $0x30] sm:$0xff]  ;;  %v23_v21 = vld [vmem:[%s812_s1 + $0x28] sm:$0xff]  ;;  %v22_v23 = vld [vmem:[%s812_s1 + $0x20] sm:$0xff] }
   0x9   :  { %495 = vmatprep.subr.mxu1 %v30_v7  ;;  %458 = vmatpush3.msra.mxu0 %v370_v6  ;;  %v361_v24 = vld [vmem:[%s812_s1 + $0x98] sm:$0xff]  ;;  %v360_v26 = vld [vmem:[%s812_s1 + $0x90] sm:$0xff]  ;;  %v359_v28 = vld [vmem:[%s812_s1 + $0x88] sm:$0xff] }
   0xa   :  { %496 = vmatpush3.msra.mxu1 %v30_v7  ;;  %459 = vmatprep.subr.mxu0 %v369_v8  ;;  %v21_v25 = vld [vmem:[%s812_s1 + $0x18] sm:$0xff]  ;;  %v20_v27 = vld [vmem:[%s812_s1 + $0x10] sm:$0xff]  ;;  %v19_v29 = vld [vmem:[%s812_s1 + $0x8] sm:$0xff] }
   0xb   :  { %497 = vmatprep.subr.mxu1 %v29_v9  ;;  %460 = vmatpush3.msra.mxu0 %v369_v8  ;;  %v358_v30 = vld [vmem:[%s812_s1 + $0x80] sm:$0xff]  ;;  %v35_v34 = vld [vmem:[%s813_s0 + $0x9] sm:$0xff]  ;;  %v389_v36 = vld [vmem:[%s812_s1 + $0x178] sm:$0xff] }
   0xc   :  { %498 = vmatpush3.msra.mxu1 %v29_v9  ;;  %461 = vmatprep.subr.mxu0 %v368_v10  ;;  %v18_v31 = vld [vmem:[%s812_s1] sm:$0xff]  ;;  %v15_v35 = vld [vmem:[%s813_s0 + $0x8] sm:$0xff]  ;;  %v388_v37 = vld [vmem:[%s812_s1 + $0x170] sm:$0xff] }
   0xd   :  { %499 = vmatprep.subr.mxu1 %v28_v11  ;;  %462 = vmatpush3.msra.mxu0 %v368_v10  ;;  %v34_v32 = vld [vmem:[%s813_s0 + $0x1] sm:$0xff]  ;;  %v385_v40 = vld [vmem:[%s812_s1 + $0x158] sm:$0xff]  ;;  %v384_v41 = vld [vmem:[%s812_s1 + $0x150] sm:$0xff] }
   0xe   :  { %500 = vmatpush3.msra.mxu1 %v28_v11  ;;  %463 = vmatprep.subr.mxu0 %v367_v12  ;;  %v14_v33 = vld [vmem:[%s813_s0] sm:$0xff]  ;;  %v387_v38 = vld [vmem:[%s812_s1 + $0x168] sm:$0xff]  ;;  %v381_v44 = vld [vmem:[%s812_s1 + $0x138] sm:$0xff] }
   0xf   :  { %501 = vmatprep.subr.mxu1 %v27_v13  ;;  %464 = vmatpush3.msra.mxu0 %v367_v12  ;;  %v386_v39 = vld [vmem:[%s812_s1 + $0x160] sm:$0xff]  ;;  %v383_v42 = vld [vmem:[%s812_s1 + $0x148] sm:$0xff]  ;;  %v380_v45 = vld [vmem:[%s812_s1 + $0x130] sm:$0xff] }
  0x10   :  { %502 = vmatpush3.msra.mxu1 %v27_v13  ;;  %465 = vmatprep.subr.mxu0 %v366_v14  ;;  %v382_v43 = vld [vmem:[%s812_s1 + $0x140] sm:$0xff]  ;;  %v379_v46 = vld [vmem:[%s812_s1 + $0x128] sm:$0xff]  ;;  %v377_v48 = vld [vmem:[%s812_s1 + $0x118] sm:$0xff] }
  0x11   :  { %503 = vmatprep.subr.mxu1 %v26_v15  ;;  %466 = vmatpush3.msra.mxu0 %v366_v14  ;;  %v378_v47 = vld [vmem:[%s812_s1 + $0x120] sm:$0xff]  ;;  %v16_v50 = vld [vmem:[%s813_s0 + $0x18] sm:$0xff]  ;;  %v376_v53 = vld [vmem:[%s812_s1 + $0x110] sm:$0xff] }
  0x12   :  { %504 = vmatpush3.msra.mxu1 %v26_v15  ;;  %467 = vmatprep.subr.mxu0 %v365_v16  ;;  %v36_v49 = vld [vmem:[%s813_s0 + $0x19] sm:$0xff]  ;;  %v37_v51 = vld [vmem:[%s813_s0 + $0x21] sm:$0xff]  ;;  %v226_v58 = vld [vmem:[%s813_s0 + $0xa] sm:$0xff] }
  0x13   :  { %505 = vmatprep.subr.mxu1 %v25_v17  ;;  %468 = vmatpush3.msra.mxu0 %v365_v16  ;;  %v17_v52 = vld [vmem:[%s813_s0 + $0x20] sm:$0xff]  ;;  %v375_v54 = vld [vmem:[%s812_s1 + $0x108] sm:$0xff] }
  0x14   :  { %506 = vmatpush3.msra.mxu1 %v25_v17  ;;  %469 = vmatprep.subr.mxu0 %v364_v18  ;;  %v374_v55 = vld [vmem:[%s812_s1 + $0x100] sm:$0xff] }
  0x15   :  { %507 = vmatprep.subr.mxu1 %v24_v19  ;;  %470 = vmatpush3.msra.mxu0 %v364_v18  ;;  %v225_v56 = vld [vmem:[%s813_s0 + $0x2] sm:$0xff]  ;;  %v227_v57 = vld [vmem:[%s813_s0 + $0x1a] sm:$0xff] }
  0x16   :  { %508 = vmatpush3.msra.mxu1 %v24_v19  ;;  %471 = vmatprep.subr.mxu0 %v363_v20  ;;  %v228_v59 = vld [vmem:[%s813_s0 + $0x22] sm:$0xff]  ;;  %v390_v7 = vld [vmem:[%s814_s2] ss:$0 sm:$0xff] }
  0x17   :  { %509 = vmatprep.subr.mxu1 %v23_v21  ;;  %472 = vmatpush3.msra.mxu0 %v363_v20 }
  0x18   :  { %510 = vmatpush3.msra.mxu1 %v23_v21  ;;  %473 = vmatprep.subr.mxu0 %v362_v22 }
  0x19   :  { %511 = vmatprep.subr.mxu1 %v22_v23  ;;  %474 = vmatpush3.msra.mxu0 %v362_v22 }
  0x1a   :  { %512 = vmatpush3.msra.mxu1 %v22_v23  ;;  %475 = vmatprep.subr.mxu0 %v361_v24 }
  0x1b   :  { %513 = vmatprep.subr.mxu1 %v21_v25  ;;  %476 = vmatpush3.msra.mxu0 %v361_v24 }
  0x1c   :  { %514 = vmatpush3.msra.mxu1 %v21_v25  ;;  %477 = vmatprep.subr.mxu0 %v360_v26 }
  0x1d   :  { %515 = vmatprep.subr.mxu1 %v20_v27  ;;  %478 = vmatpush3.msra.mxu0 %v360_v26 }
  0x1e   :  { %516 = vmatpush3.msra.mxu1 %v20_v27  ;;  %479 = vmatprep.subr.mxu0 %v359_v28 }
  0x1f   :  { %517 = vmatprep.subr.mxu1 %v19_v29  ;;  %480 = vmatpush3.msra.mxu0 %v359_v28 }
  0x20   :  { %518 = vmatpush3.msra.mxu1 %v19_v29  ;;  %481 = vmatprep.subr.mxu0 %v358_v30 }
  0x21   :  { %519 = vmatprep.subr.mxu1 %v18_v31  ;;  %482 = vmatpush3.msra.mxu0 %v358_v30 }
  0x22   :  { %483 = vmatprep.mubr.f32.mxu0 %v34_v32  ;;  %520 = vmatpush3.msra.mxu1 %v18_v31 }
  0x23   :  { %521 = vmatprep.mubr.f32.mxu1 %v14_v33  ;;  %484 = vmatmul.mubr.f32.vlgmr.msra.gmra.mxu0 %v35_v34 }
  0x24   :  { %522 = vmatmul.mubr.f32.vlgmr.msra.gmra.mxu1 %v15_v35  ;;  %527 = vmatprep.subr.mxu0 %v389_v36 }
  0x25   :  { %565 = vmatprep.subr.mxu1 %v389_v36  ;;  %528 = vmatpush3.msra.mxu0 %v389_v36 }
  0x26   :  { %581 = vmatpush3.msra.mxu1 %v389_v36  ;;  %529 = vmatprep.subr.mxu0 %v388_v37 }
  0x27   :  { %566 = vmatprep.subr.mxu1 %v388_v37  ;;  %530 = vmatpush3.msra.mxu0 %v388_v37 }
  0x28   :  { %582 = vmatpush3.msra.mxu1 %v388_v37  ;;  %531 = vmatprep.subr.mxu0 %v387_v38 }
  0x29   :  { %567 = vmatprep.subr.mxu1 %v387_v38  ;;  %532 = vmatpush3.msra.mxu0 %v387_v38 }
  0x2a   :  { %583 = vmatpush3.msra.mxu1 %v387_v38  ;;  %533 = vmatprep.subr.mxu0 %v386_v39 }
  0x2b   :  { %568 = vmatprep.subr.mxu1 %v386_v39  ;;  %534 = vmatpush3.msra.mxu0 %v386_v39 }
  0x2c   :  { %584 = vmatpush3.msra.mxu1 %v386_v39  ;;  %535 = vmatprep.subr.mxu0 %v385_v40 }
  0x2d   :  { %569 = vmatprep.subr.mxu1 %v385_v40  ;;  %536 = vmatpush3.msra.mxu0 %v385_v40 }
  0x2e   :  { %585 = vmatpush3.msra.mxu1 %v385_v40  ;;  %537 = vmatprep.subr.mxu0 %v384_v41 }
  0x2f   :  { %570 = vmatprep.subr.mxu1 %v384_v41  ;;  %538 = vmatpush3.msra.mxu0 %v384_v41 }
  0x30   :  { %586 = vmatpush3.msra.mxu1 %v384_v41  ;;  %539 = vmatprep.subr.mxu0 %v383_v42 }
  0x31   :  { %571 = vmatprep.subr.mxu1 %v383_v42  ;;  %540 = vmatpush3.msra.mxu0 %v383_v42 }
  0x32   :  { %587 = vmatpush3.msra.mxu1 %v383_v42  ;;  %541 = vmatprep.subr.mxu0 %v382_v43 }
  0x33   :  { %572 = vmatprep.subr.mxu1 %v382_v43  ;;  %542 = vmatpush3.msra.mxu0 %v382_v43 }
  0x34   :  { %588 = vmatpush3.msra.mxu1 %v382_v43  ;;  %543 = vmatprep.subr.mxu0 %v381_v44 }
  0x35   :  { %573 = vmatprep.subr.mxu1 %v381_v44  ;;  %544 = vmatpush3.msra.mxu0 %v381_v44 }
  0x36   :  { %589 = vmatpush3.msra.mxu1 %v381_v44  ;;  %545 = vmatprep.subr.mxu0 %v380_v45 }
  0x37   :  { %574 = vmatprep.subr.mxu1 %v380_v45  ;;  %546 = vmatpush3.msra.mxu0 %v380_v45 }
  0x38   :  { %590 = vmatpush3.msra.mxu1 %v380_v45  ;;  %547 = vmatprep.subr.mxu0 %v379_v46 }
  0x39   :  { %575 = vmatprep.subr.mxu1 %v379_v46  ;;  %548 = vmatpush3.msra.mxu0 %v379_v46 }
  0x3a   :  { %591 = vmatpush3.msra.mxu1 %v379_v46  ;;  %549 = vmatprep.subr.mxu0 %v378_v47 }
  0x3b   :  { %576 = vmatprep.subr.mxu1 %v378_v47  ;;  %550 = vmatpush3.msra.mxu0 %v378_v47 }
  0x3c   :  { %592 = vmatpush3.msra.mxu1 %v378_v47  ;;  %551 = vmatprep.subr.mxu0 %v377_v48 }
  0x3d   :  { %577 = vmatprep.subr.mxu1 %v377_v48  ;;  %486 = vmatprep.mubr.f32.mxu0 %v36_v49 }
  0x3e   :  { %524 = vmatprep.mubr.f32.mxu1 %v16_v50  ;;  %552 = vmatpush3.msra.mxu0 %v377_v48 }
  0x3f   :  { %593 = vmatpush3.msra.mxu1 %v377_v48  ;;  %487 = vmatmul.mubr.f32.gmra.mxu0 %v37_v51 }
  0x40   :  { %525 = vmatmul.mubr.f32.gmra.mxu1 %v17_v52  ;;  %553 = vmatprep.subr.mxu0 %v376_v53 }
  0x41   :  { %578 = vmatprep.subr.mxu1 %v376_v53  ;;  %554 = vmatpush3.msra.mxu0 %v376_v53 }
  0x42   :  { %594 = vmatpush3.msra.mxu1 %v376_v53  ;;  %555 = vmatprep.subr.mxu0 %v375_v54 }
  0x43   :  { %579 = vmatprep.subr.mxu1 %v375_v54  ;;  %556 = vmatpush3.msra.mxu0 %v375_v54 }
  0x44   :  { %595 = vmatpush3.msra.mxu1 %v375_v54  ;;  %557 = vmatprep.subr.mxu0 %v374_v55 }
  0x45   :  { %580 = vmatprep.subr.mxu1 %v374_v55  ;;  %558 = vmatpush3.msra.mxu0 %v374_v55 }
  0x46   :  { %596 = vmatpush3.msra.mxu1 %v374_v55  ;;  %559 = vmatprep.mubr.f32.mxu0 %v225_v56 }
  0x47   :  { %562 = vmatprep.mubr.f32.mxu1 %v227_v57  ;;  %560 = vmatmul.mubr.f32.vlgmr.msra.gmra.mxu0 %v226_v58 }
  0x48   :  { %563 = vmatmul.mubr.f32.vlgmr.msra.gmra.mxu1 %v228_v59 }
  0xe3   :  { %v485_v60 = vpop.f32.mrf.mxu0 }
  0xe4   :  { %v523_v61 = vpop.f32.mrf.mxu1 }
  0xe5   :  { %v121_v62 = vpop.f32.mrf.mxu0  ;;  %v212_v4 = vadd.f32 %v523_v61, %v485_v60 }
  0xe6   :  { %v206_v63 = vpop.f32.mrf.mxu1 }
  0xe7   :  { %v207_v9 = vadd.f32 %v206_v63, %v121_v62 }
  0xff   :  { %v488_v0 = vpop.f32.mrf.mxu0 }
 0x100   :  { %v526_v1 = vpop.f32.mrf.mxu1 }
 0x101   :  { %v131_v2 = vpop.f32.mrf.mxu0  ;;  %v222_v5 = vadd.f32 %v526_v1, %v488_v0 }
 0x102   :  { %v216_v3 = vpop.f32.mrf.mxu1 }
 0x103   :  { %v217_v10 = vadd.f32 %v216_v3, %v131_v2 }
 0x107   :  { %v561_v6 = vpop.f32.mrf.mxu0 }
 0x108   :  { %v564_v8 = vpop.f32.mrf.mxu1  ;;  %v332_v11 = vadd.f32 %v561_v6, %v212_v4 }
 0x109   :  { %v334_v12 = vadd.f32 %v564_v8, %v222_v5  ;;  %v312_v13 = vpop.f32.mrf.mxu0 }
 0x10a   :  { %v322_v14 = vpop.f32.mrf.mxu1  ;;  %v343_v15 = vadd.f32 %v390_v7, %v332_v11  ;;  %v331_v17 = vadd.f32 %v312_v13, %v207_v9 }
 0x10b   :  { %v345_v16 = vadd.f32 %v390_v7, %v334_v12  ;;  %v333_v18 = vadd.f32 %v322_v14, %v217_v10 }
 0x10c   :  { %v347_v19 = vmax.f32 %v343_v15, 0.0  ;;  %v342_v21 = vadd.f32 %v390_v7, %v331_v17 }
 0x10d   :  { %v349_v20 = vmax.f32 %v345_v16, 0.0  ;;  %v344_v22 = vadd.f32 %v390_v7, %v333_v18 }
 0x10e   :  { %351 = vst [vmem:[%s815_s3 + $0x8] sm:$0xff] %v347_v19  ;;  %v346_v23 = vmax.f32 %v342_v21, 0.0 }
 0x10f   :  { %353 = vst [vmem:[%s815_s3 + $0x18] sm:$0xff] %v349_v20  ;;  %v348_v24 = vmax.f32 %v344_v22, 0.0 }
 0x110   :  { %350 = vst [vmem:[%s815_s3] sm:$0xff] %v346_v23 }
 0x111   :  { %352 = vst [vmem:[%s815_s3 + $0x10] sm:$0xff] %v348_v24 }

</bundles_post_ra>
